<compile_context>
chip_gen: v7x
topology: tpu7x:2x2x1
jax: 0.10.0
libtpu: 0.0.40
codegen_flags: <defaults>
</compile_context>

<pallas_src>
import jax
import jax.numpy as jnp
from jax.experimental import pallas as pl
from jax.experimental.pallas import tpu as pltpu

LEAKY_SLOPE = 0.2  # stands in for args.leaky


# --------------------------------------------------------------------------
# Gate kernel: X = embeds * (2 * sigmoid(zishiying) - 1)   (one pass)
# --------------------------------------------------------------------------
def _gate_kernel(emb_ref, z_ref, x_ref):
    gate = jax.nn.sigmoid(z_ref[...]) * 2.0 - 1.0
    x_ref[...] = (emb_ref[...] * gate).astype(x_ref.dtype)


def _gated_embeds(embeds, zishiying, *, tm, tn, out_dtype):
    N, D = embeds.shape
    grid = (N // tm, D // tn)
    return pl.pallas_call(
        _gate_kernel,
        out_shape=jax.ShapeDtypeStruct((N, D), out_dtype),
        grid_spec=pltpu.PrefetchScalarGridSpec(
            num_scalar_prefetch=0,
            grid=grid,
            in_specs=[
                pl.BlockSpec((tm, tn), lambda i, j: (i, j)),
                pl.BlockSpec((tm, tn), lambda i, j: (i, j)),
            ],
            out_specs=pl.BlockSpec((tm, tn), lambda i, j: (i, j)),
        ),
        compiler_params=pltpu.CompilerParams(
            dimension_semantics=("parallel", "parallel")),
    )(embeds, zishiying)


# --------------------------------------------------------------------------
# Matmul kernels: out = leaky_relu(adj @ X)
# --------------------------------------------------------------------------
def _matmul_single_k_kernel(adj_ref, x_ref, o_ref):
    # Whole reduction in one shot (no k grid axis): latency-optimal for small N.
    acc = jnp.dot(adj_ref[...], x_ref[...], preferred_element_type=jnp.float32)
    o_ref[...] = jnp.maximum(acc, LEAKY_SLOPE * acc).astype(o_ref.dtype)


def _matmul_kloop_kernel(adj_ref, x_ref, o_ref):
    # k (neighbor) reduction over grid axis 2; accumulate directly into the
    # resident f32 output block (no scratch accumulator needed).
    @pl.when(pl.program_id(2) == 0)
    def _():
        o_ref[...] = jnp.zeros_like(o_ref)

    o_ref[...] += jnp.dot(adj_ref[...], x_ref[...],
                          preferred_element_type=jnp.float32)

    @pl.when(pl.program_id(2) == pl.num_programs(2) - 1)
    def _():
        a = o_ref[...]
        o_ref[...] = jnp.maximum(a, LEAKY_SLOPE * a)


# --------------------------------------------------------------------------
# Tile selection helpers
# --------------------------------------------------------------------------
def _tile(dim, cap=512):
    """Largest block <= cap that evenly tiles `dim` and respects (8,128) layout."""
    if dim <= cap:
        return dim                      # full-extent block is always legal
    t = (cap // 128) * 128
    while t >= 128:
        if dim % t == 0:
            return t
        t -= 128
    return dim                          # fallback: no tiling along this axis


# --------------------------------------------------------------------------
# Layer wrapper
# --------------------------------------------------------------------------
def gcn_layer(adj, embeds, zishiying, *, use_bf16=False,
              tm=None, tn=None, tk=None):
    N, N2 = adj.shape
    N3, D = embeds.shape
    assert N == N2 == N3 and zishiying.shape == (N, D)

    # Tile selection: 512 cap fills the 256x256 MXU on v6e/v7x while keeping the
    # double-buffered working set far below every generation's scoped-VMEM default.
    tn = tn if tn is not None else _tile(D, 512)
    tk = tk if tk is not None else _tile(N, 512)
    if tm is None:
        tm = _tile(N, 512)
        # Keep >= 2 row blocks when possible so both v7x TensorCores get work.
        if N // tm < 2 and N >= 256:
            tm_half = _tile(N, max(128, (N // 2 // 128) * 128))
            if N % tm_half == 0:
                tm = tm_half
    assert N % tm == 0 and N % tk == 0 and D % tn == 0

    mm_dtype = jnp.bfloat16 if use_bf16 else jnp.float32

    # Pre-gate the embeddings once (halves B-operand HBM traffic vs. re-gating
    # per i-block, and removes the sigmoid from the MXU inner loop).
    x = _gated_embeds(embeds, zishiying, tm=tm, tn=tn, out_dtype=mm_dtype)
    adj_mm = adj.astype(mm_dtype)

    kt = N // tk
    if kt == 1:
        grid = (N // tm, D // tn)
        kernel = _matmul_single_k_kernel
        in_specs = [
            pl.BlockSpec((tm, tk), lambda i, j: (i, 0)),
            pl.BlockSpec((tk, tn), lambda i, j: (0, j)),
        ]
        out_spec = pl.BlockSpec((tm, tn), lambda i, j: (i, j))
        dim_sem = ("parallel", "parallel")
    else:
        grid = (N // tm, D // tn, kt)
        kernel = _matmul_kloop_kernel
        in_specs = [
            pl.BlockSpec((tm, tk), lambda i, j, k: (i, k)),
            pl.BlockSpec((tk, tn), lambda i, j, k: (k, j)),
        ]
        out_spec = pl.BlockSpec((tm, tn), lambda i, j, k: (i, j))
        dim_sem = ("parallel", "parallel", "arbitrary")

    return pl.pallas_call(
        kernel,
        out_shape=jax.ShapeDtypeStruct((N, D), jnp.float32),
        grid_spec=pltpu.PrefetchScalarGridSpec(
            num_scalar_prefetch=0,
            grid=grid,
            in_specs=in_specs,
            out_specs=out_spec,
        ),
        compiler_params=pltpu.CompilerParams(dimension_semantics=dim_sem),
    )(adj_mm, x)


def gcn_reference(adj, embeds, zishiying):
    aij = jax.nn.sigmoid(zishiying) * 2.0 - 1.0
    pre = adj @ (embeds * aij)
    return jnp.where(pre >= 0.0, pre, LEAKY_SLOPE * pre)


if __name__ == "__main__":
    key = jax.random.PRNGKey(0)
    k_adj, k_emb, k_z, k_mask = jax.random.split(key, 4)

    N, D = 256, 128  # small graph: 256 nodes, 128-dim embeddings

    # Sparse-ish adjacency built densely (spmm semantics == dense matmul here).
    adj_dense = jax.random.uniform(k_adj, (N, N), dtype=jnp.float32)
    mask = (jax.random.uniform(k_mask, (N, N)) < 0.1).astype(jnp.float32)
    adj = adj_dense * mask

    embeds = jax.random.normal(k_emb, (N, D), dtype=jnp.float32)
    zishiying = jax.random.normal(k_z, (N, D), dtype=jnp.float32)

    out = gcn_layer(adj, embeds, zishiying)
    out = jax.block_until_ready(out)

    ref = gcn_reference(adj, embeds, zishiying)
    assert out.shape == (N, D)
    assert jnp.allclose(out, ref, atol=1e-4, rtol=1e-4)

    print("KERNEL_OK")
</pallas_src>

<mosaic_0001>
module attributes {stable_mosaic.version = 11 : i64} {
  func.func @_gate_kernel(%arg0: i32, %arg1: i32, %arg2: memref<128x128xf32, #tpu.memory_space<vmem>>, %arg3: memref<128x128xf32, #tpu.memory_space<vmem>>, %arg4: memref<128x128xf32, #tpu.memory_space<vmem>>) attributes {dimension_semantics = [#tpu.dimension_semantics<parallel>, #tpu.dimension_semantics<parallel>], iteration_bounds = array<i64: 2, 1>, scalar_prefetch = 0 : i64, scratch_operands = 0 : i64, tpu.core_type = #tpu.core_type<tc>, window_params = [{transform_indices = @transform_0, window_bounds = array<i64: 128, 128>}, {transform_indices = @transform_1, window_bounds = array<i64: 128, 128>}, {transform_indices = @transform_2, window_bounds = array<i64: 128, 128>}]} {
    %c0 = arith.constant 0 : index
    %c0_0 = arith.constant 0 : index
    %0 = vector.load %arg3[%c0, %c0_0] : memref<128x128xf32, #tpu.memory_space<vmem>>, vector<128x128xf32>
    %1 = arith.negf %0 : vector<128x128xf32>
    %2 = math.exp %1 : vector<128x128xf32>
    %cst = arith.constant 1.000000e+00 : f32
    %3 = vector.broadcast %cst : f32 to vector<128x128xf32>
    %4 = arith.addf %3, %2 : vector<128x128xf32>
    %5 = arith.divf %3, %4 : vector<128x128xf32>
    %cst_1 = arith.constant 2.000000e+00 : f32
    %6 = vector.broadcast %cst_1 : f32 to vector<128x128xf32>
    %7 = arith.mulf %5, %6 : vector<128x128xf32>
    %cst_2 = arith.constant 1.000000e+00 : f32
    %8 = vector.broadcast %cst_2 : f32 to vector<128x128xf32>
    %9 = arith.subf %7, %8 : vector<128x128xf32>
    %c0_3 = arith.constant 0 : index
    %c0_4 = arith.constant 0 : index
    %10 = vector.load %arg2[%c0_3, %c0_4] : memref<128x128xf32, #tpu.memory_space<vmem>>, vector<128x128xf32>
    %11 = arith.mulf %10, %9 : vector<128x128xf32>
    %c0_5 = arith.constant 0 : index
    %c0_6 = arith.constant 0 : index
    %12 = vector.load %arg4[%c0_5, %c0_6] : memref<128x128xf32, #tpu.memory_space<vmem>>, vector<128x128xf32>
    tpu.vector_store %arg4[%c0_5, %c0_6], %11 {strides = array<i32>} : memref<128x128xf32, #tpu.memory_space<vmem>>, vector<128x128xf32>,
    return
  }
  func.func @transform_0(%arg0: i32, %arg1: i32) -> (i32, i32) {
    %c0_i32 = arith.constant 0 : i32
    return %arg0, %arg1 : i32, i32
  }
  func.func @transform_1(%arg0: i32, %arg1: i32) -> (i32, i32) {
    %c0_i32 = arith.constant 0 : i32
    return %arg0, %arg1 : i32, i32
  }
  func.func @transform_2(%arg0: i32, %arg1: i32) -> (i32, i32) {
    %c0_i32 = arith.constant 0 : i32
    return %arg0, %arg1 : i32, i32
  }
}

</mosaic_0001>

<bundles_post_ra>
// kernel: tpu_custom_call.1
= control target key start
LH: loop header
LB: loop body
LE: loop exit
PB: predicated region body
PF: predicated region fallthrough
CT: control target
= control target key end

     0   :  { %7 = vsyncpa [#allocation3], 0  ;;  %s1197_s0 = inlined_call_operand.hbm [shape: f32[256,128], index: 0, kind: input, shape index: {}]   ;;  %s1198_s1 = inlined_call_operand.hbm [shape: f32[256,128], index: 1, kind: input, shape index: {}]   ;;  %s1199_s2 = inlined_call_operand.hbm [shape: f32[256,128], index: 2, kind: output, shape index: {}]  }
   0x1   :  { %9 = vsyncpa [#allocation3 + $0x1], 0 }
   0x2   :  { %10 = vsyncpa [#allocation6], 0 }
   0x3   :  { %12 = vsyncpa [#allocation6 + $0x1], 0 }
   0x4   :  { %13 = vsyncpa [#allocation4], 0 }
   0x5   :  { %15 = vsyncpa [#allocation4 + $0x1], 0  ;;  %s901_s9 = smov 0   ;;  %s903_s10 = smov 0  }
   0x6   :  { %s905_s11 = smov 0   ;;  %s907_s12 = smov 0  }
   0x7   :  { %s909_s13 = smov 0   ;;  %s911_s14 = smov 0  }
   0x8 LB: > { %s542_s15 = sadd.s32 4294967295, %s877_s14   ;;  %s543_s16 = sadd.s32 4294967294, %s877_s14   ;;  %s877_s14 = sphi %s911_s14, %s21_s14   ;;  %s873_s13 = sphi %s909_s13, %s1217_s13   ;;  %s869_s12 = sphi %s907_s12, %s1216_s12   ;;  %s865_s11 = sphi %s905_s11, %s1215_s11   ;;  %s861_s10 = sphi %s903_s10, %s1214_s10   ;;  %s857_s9 = sphi %s901_s9, %s1213_s9  }
   0x9   : > { %s33_s17 = sadd.s32 1, %s873_s13  ;;  %s42_s18 = sadd.s32 1, %s865_s11 }
   0xa   : > { %p35_p0 = scmp.ge.s32.totalorder %s33_s17, 2  ;;  %p49_p1 = scmp.ne.s32.totalorder %s865_s11, %s861_s10 }
   0xb   : > { %p50_p2 = scmp.eq.s32.totalorder %s877_s14, 0  ;;  %p55_p3 = scmp.ne.s32.totalorder %s861_s10, %s857_s9 }
   0xc   : > { %s1219_s17 = smov (%p35_p0, %s33_s17), 0  ;;  %p56_p5 = scmp.eq.s32.totalorder %s542_s15, 0 }
   0xd   : > { %p942_p4 = por %p50_p2, %p49_p1  ;;  %s37_s20 = ssub.s32 %s873_s13, %s1219_s17 }
   0xe   : > { %p109_p6 = scmp.eq.s32.totalorder %s542_s15, 1  ;;  %p40_p7 = scmp.eq.s32.totalorder %s37_s20, 0 }
   0xf   : > { %p948_p8 = por %p56_p5, %p55_p3  ;;  %p115_p10 = scmp.eq.s32.totalorder %s543_s16, 1 }
  0x10   : > { %p952_p9 = por %p109_p6, %p49_p1  ;;  %p613_p13 = scmp.lt.s32.totalorder %s877_s14, 2 }
  0x11   : > { %s1203_s21 = scalar_select %p948_p8, 1, 0 }
  0x12   : > { %s1204_s22 = scalar_select %p952_p9, 1, 0 }
  0x13   : > { %s957_s23 = scalar_select %p40_p7, %s865_s11, %s42_s18  }
  0x14   : > { %p959_p11 = por %p115_p10, %p55_p3  ;;  %s966_s25 = sand.u32 1, %s865_s11  }
  0x15   : > { %s546_s26 = sshll.u32 %s966_s25, 7  ;;  %s593_s27 = sshll.u32 %s873_s13, 11 }
  0x16   : > { %s1205_s24 = scalar_select %p959_p11, 1, 0 }
  0x17   : > { %s975_s30 = scalar_lea.hbm %s1197_s0, %s593_s27  ;;  %s139_s3 = scalar_lea.vmem [#allocation2], %s546_s26 }
  0x18   : > { %s147_s4 = sshll.u32 %s139_s3, 4  ;;  %p983_p0 = pnand %p613_p13, %p942_p4  ;;  %s979_s4 = int_to_ptr.vmem [resolvable:$true] %s147_s4 }
  0x19   : > { %s136_s6 = scalar_lea.sflag [#allocation3], %s966_s25  ;;  %s731_s7 = scalar_lea.hbm %s975_s30, 2048 }
  0x1a   : > { %p732_p2 = scmp.ne.s32.totalorder %s975_s30, %s731_s7  ;;  %p733_p3 = pneg %p983_p0 }
  0x1b   : > { %s736_s16 = scalar_lea.hbm %s1197_s0, 4096  ;;  %p737_p4 = scmp.lt.u32.totalorder %s975_s30, %s1197_s0 }
  0x1c   : > { %p734_p5 = pnand %p733_p3, %p732_p2  ;;  %p738_p7 = scmp.lt.u32.totalorder %s736_s16, %s731_s7 }
  0x1d   : > { %p740_p13 = scmp.lt.u32.totalorder %s731_s7, %s975_s30 }
  0x1e   : > { %p735_p6 = pneg %p734_p5  ;;  %p739_p10 = por %p738_p7, %p737_p4 }
  0x20   : > { %p741_p12 = por %p740_p13, %p739_p10 }
  0x22   : > { %p742_p1 = pnand %p741_p12, %p735_p6 }
  0x24   : > { %745 = shalt.err (!%p742_p1)
}
  0x25   : > { %s746_s20 = scalar_lea.vmem %s979_s4, 2048  ;;  %s879_s28 = smov [#allocation2]  }
  0x26   : > { %p747_p2 = scmp.ne.s32.totalorder %s979_s4, %s746_s20  ;;  %s751_s29 = sshll.u32 %s879_s28, 4  ;;  %s752_s29 = int_to_ptr.vmem [resolvable:$false] %s751_s29 }
  0x27   : > { %s753_s3 = scalar_lea.vmem %s752_s29, 4096  ;;  %p754_p9 = scmp.lt.s32.totalorder %s979_s4, %s752_s29 }
  0x28   : > { %p749_p5 = pnand %p747_p2, %p733_p3  ;;  %p755_p4 = scmp.lt.s32.totalorder %s753_s3, %s746_s20 }
  0x2a   : > { %p750_p11 = pneg %p749_p5  ;;  %p756_p7 = por %p755_p4, %p754_p9 }
  0x2c   : > { %p757_p10 = pnand %p756_p7, %p750_p11 }
  0x2e   : > { %760 = shalt.err (!%p757_p10)
}
  0x2f   : > { %s880_s7 = smov 128   ;;  %s881_s8 = smov 8  }
  0x30   : > { %605 = dma.hbm_to_vmem [thread:$0]  (!%p983_p0), %s975_s30, 2048, %s979_s4, %s136_s6, %s880_s7, %s880_s7, %s881_s8  }
  0x31   : > { %p177_p9 = scmp.lt.s32.totalorder %s877_s14, 3  ;;  %s1025_s18 = scalar_lea.hbm %s1198_s1, %s593_s27 }
  0x32   : > { %p1207_p11 = scmp.ge.s32.totalorder %s877_s14, 1  ;;  %s161_s20 = scalar_lea.vmem [#allocation5], %s546_s26 }
  0x33   : > { %s169_s28 = sshll.u32 %s161_s20, 4  ;;  %s158_s30 = scalar_lea.sflag [#allocation6], %s966_s25  ;;  %s1035_s28 = int_to_ptr.vmem [resolvable:$true] %s169_s28 }
  0x34   : > { %p1029_p12 = pnand %p1207_p11, %p177_p9  ;;  %s761_s4 = scalar_lea.hbm %s1025_s18, 2048 }
  0x35   : > { %p762_p1 = scmp.ne.s32.totalorder %s1025_s18, %s761_s4  ;;  %s766_s29 = scalar_lea.hbm %s1198_s1, 4096 }
  0x36   : > { %p767_p2 = scmp.lt.u32.totalorder %s1025_s18, %s1198_s1  ;;  %p768_p5 = scmp.lt.u32.totalorder %s766_s29, %s761_s4 }
  0x37   : > { %p764_p6 = pnand %p762_p1, %p733_p3  ;;  %p770_p7 = scmp.lt.u32.totalorder %s761_s4, %s1025_s18 }
  0x38   : > { %p769_p4 = por %p768_p5, %p767_p2 }
  0x39   : > { %p765_p13 = pneg %p764_p6 }
  0x3a   : > { %p771_p10 = por %p770_p7, %p769_p4 }
  0x3c   : > { %p772_p9 = pnand %p771_p10, %p765_p13 }
  0x3e   : > { %775 = shalt.err (!%p772_p9)
}
  0x3f   : > { %s776_s26 = scalar_lea.vmem %s1035_s28, 2048  ;;  %s882_s16 = smov [#allocation5]  }
  0x40   : > { %p777_p11 = scmp.ne.s32.totalorder %s1035_s28, %s776_s26  ;;  %s781_s20 = sshll.u32 %s882_s16, 4  ;;  %s782_s20 = int_to_ptr.vmem [resolvable:$false] %s781_s20 }
  0x41   : > { %s783_s27 = scalar_lea.vmem %s782_s20, 4096  ;;  %p784_p8 = scmp.lt.s32.totalorder %s1035_s28, %s782_s20 }
  0x42   : > { %p779_p1 = pnand %p777_p11, %p733_p3  ;;  %p785_p2 = scmp.lt.s32.totalorder %s783_s27, %s776_s26 }
  0x44   : > { %p780_p6 = pneg %p779_p1  ;;  %p786_p5 = por %p785_p2, %p784_p8 }
  0x46   : > { %p787_p4 = pnand %p786_p5, %p780_p6 }
  0x48   : > { %790 = shalt.err (!%p787_p4)
}
  0x49   : > { %608 = dma.hbm_to_vmem [thread:$0]  (!%p983_p0), %s1025_s18, 2048, %s1035_s28, %s158_s30, %s880_s7, %s880_s7, %s881_s8  }
  0x4a   : > { %181 = sbr.rel (%p1029_p12) target bundleno = 160 (0xa0), region = 28  ;;  %s1069_s4 = sand.u32 (!%p1029_p12), 1, %s861_s10  }
  0x4b   : > { %s1072_s6 = sshll.u32 (!%p1029_p12), %s1069_s4, 7  ;;  %s184_s5 = scalar_lea.sflag (!%p1029_p12), [#allocation3], %s1069_s4 }
  0x4c   : > { %s1076_s29 = scalar_lea.vmem (!%p1029_p12), [#allocation2], %s1072_s6  ;;  %p1209_p8 = scmp.ne.s32.totalorder (!%p1029_p12), %s1203_s21, 0 }
  0x51   : > { %844 = dma.done.wait (%p1209_p8), %s184_s5, 2048  }
  0x52   : > { %846 = vsyncadd (%p1209_p8), %s184_s5, 4294965248  ;;  %s193_s25 = scalar_lea.sflag [#allocation6], %s1069_s4  ;;  %s1084_s7 = scalar_lea.vmem [#allocation5], %s1072_s6 }
  0x53   : > { %848 = dma.done.wait (%p1209_p8), %s193_s25, 2048  }
  0x54   : > { %850 = vsyncadd (%p1209_p8), %s193_s25, 4294965248  ;;  %v225_v0 = vld [vmem:[%s1084_s7] sm:$0xff]  ;;  %v226_v1 = vld [vmem:[%s1084_s7 + $0x8] sm:$0xff]  ;;  %s1112_s21 = scalar_lea.vmem [#allocation7], %s1072_s6  ;;  %s595_s8 = sshll.u32 %s869_s12, 11 }
  0x55   : > { %v556_v2 = vmul.f32 -1.442695, %v225_v0  ;;  %v557_v3 = vmul.f32 -1.442695, %v226_v1  ;;  %v227_v4 = vld [vmem:[%s1084_s7 + $0x10] sm:$0xff]  ;;  %v228_v6 = vld [vmem:[%s1084_s7 + $0x18] sm:$0xff]  ;;  %s1143_s30 = scalar_lea.hbm %s1199_s2, %s595_s8 }
  0x56   : > { %v558_v5 = vmul.f32 -1.442695, %v227_v4  ;;  %v559_v7 = vmul.f32 -1.442695, %v228_v6  ;;  %v229_v8 = vld [vmem:[%s1084_s7 + $0x20] sm:$0xff]  ;;  %v230_v9 = vld [vmem:[%s1084_s7 + $0x28] sm:$0xff] }
  0x57   : > { %667 = vpow2.f32 %v556_v2  ;;  %v560_v10 = vmul.f32 -1.442695, %v229_v8  ;;  %v561_v11 = vmul.f32 -1.442695, %v230_v9  ;;  %v231_v12 = vld [vmem:[%s1084_s7 + $0x30] sm:$0xff]  ;;  %v232_v14 = vld [vmem:[%s1084_s7 + $0x38] sm:$0xff] }
  0x58   : > { %669 = vpow2.f32 %v557_v3  ;;  %v562_v13 = vmul.f32 -1.442695, %v231_v12  ;;  %v563_v15 = vmul.f32 -1.442695, %v232_v14  ;;  %v233_v16 = vld [vmem:[%s1084_s7 + $0x40] sm:$0xff]  ;;  %v234_v17 = vld [vmem:[%s1084_s7 + $0x48] sm:$0xff] }
  0x59   : > { %671 = vpow2.f32 %v558_v5  ;;  %v564_v18 = vmul.f32 -1.442695, %v233_v16  ;;  %v235_v19 = vld [vmem:[%s1084_s7 + $0x50] sm:$0xff]  ;;  %v565_v20 = vmul.f32 -1.442695, %v234_v17  ;;  %v236_v21 = vld [vmem:[%s1084_s7 + $0x58] sm:$0xff] }
  0x5a   : > { %673 = vpow2.f32 %v559_v7  ;;  %v566_v22 = vmul.f32 -1.442695, %v235_v19  ;;  %v237_v23 = vld [vmem:[%s1084_s7 + $0x60] sm:$0xff]  ;;  %v567_v24 = vmul.f32 -1.442695, %v236_v21  ;;  %v238_v45 = vld [vmem:[%s1084_s7 + $0x68] sm:$0xff] }
  0x5b   : > { %675 = vpow2.f32 %v560_v10  ;;  %v568_v25 = vmul.f32 -1.442695, %v237_v23  ;;  %v239_v48 = vld [vmem:[%s1084_s7 + $0x70] sm:$0xff]  ;;  %v240_v51 = vld [vmem:[%s1084_s7 + $0x78] sm:$0xff]  ;;  %v569_v54 = vmul.f32 -1.442695, %v238_v45 }
  0x5c   : > { %677 = vpow2.f32 %v561_v11  ;;  %v570_v57 = vmul.f32 -1.442695, %v239_v48  ;;  %v571_v60 = vmul.f32 -1.442695, %v240_v51  ;;  %v369_v62 = vld [vmem:[%s1076_s29] sm:$0xff]  ;;  %v370_v2 = vld [vmem:[%s1076_s29 + $0x8] sm:$0xff] }
  0x5d   : > { %679 = vpow2.f32 %v562_v13  ;;  %v371_v6 = vld [vmem:[%s1076_s29 + $0x10] sm:$0xff]  ;;  %v372_v11 = vld [vmem:[%s1076_s29 + $0x18] sm:$0xff]  ;;  %v373_v16 = vld [vmem:[%s1076_s29 + $0x20] sm:$0xff]  ;;  %s432_s18 = sshll.u32 %s1112_s21, 4  ;;  %s418_s12 = scalar_lea.sflag [#allocation4], %s1069_s4  ;;  %s1145_s18 = int_to_ptr.vmem [resolvable:$true] %s432_s18 }
  0x5e   : > { %681 = vpow2.f32 %v563_v15  ;;  %v374_v21 = vld [vmem:[%s1076_s29 + $0x28] sm:$0xff]  ;;  %v380_v51 = vld [vmem:[%s1076_s29 + $0x58] sm:$0xff]  ;;  %s791_s3 = scalar_lea.vmem %s1145_s18, 2048  ;;  %p1210_p3 = scmp.ne.s32.totalorder %s1204_s22, 0 }
  0x5f   : > { %683 = vpow2.f32 %v564_v18  ;;  %p792_p0 = scmp.ne.s32.totalorder %s1145_s18, %s791_s3  ;;  %s883_s15 = smov [#allocation7]  }
  0x60   : > { %685 = vpow2.f32 %v565_v20  ;;  %s795_s26 = sshll.u32 %s883_s15, 4  ;;  %s796_s26 = int_to_ptr.vmem [resolvable:$false] %s795_s26 }
  0x61   : > { %v668_v26 = vpop.eup %667  ;;  %687 = vpow2.f32 %v566_v22  ;;  %p793_p12 = pnand %p792_p0, %p1210_p3  ;;  %s797_s16 = scalar_lea.vmem %s796_s26, 4096 }
  0x62   : > { %v670_v27 = vpop.eup %669  ;;  %v289_v28 = vadd.f32 1.0, %v668_v26  ;;  %689 = vpow2.f32 %v567_v24  ;;  %v375_v26 = vld [vmem:[%s1076_s29 + $0x30] sm:$0xff]  ;;  %p798_p7 = scmp.lt.s32.totalorder %s1145_s18, %s796_s26  ;;  %p799_p10 = scmp.lt.s32.totalorder %s797_s16, %s791_s3 }
  0x63   : > { %v672_v29 = vpop.eup %671  ;;  %v290_v30 = vadd.f32 1.0, %v670_v27  ;;  %691 = vpow2.f32 %v568_v25  ;;  %p794_p13 = pneg %p793_p12 }
  0x64   : > { %v674_v31 = vpop.eup %673  ;;  %693 = vrcp.f32 %v289_v28  ;;  %v291_v32 = vadd.f32 1.0, %v672_v29  ;;  %p800_p9 = por %p799_p10, %p798_p7 }
  0x65   : > { %v676_v33 = vpop.eup %675  ;;  %695 = vrcp.f32 %v290_v30  ;;  %v292_v34 = vadd.f32 1.0, %v674_v31  ;;  %v376_v31 = vld [vmem:[%s1076_s29 + $0x38] sm:$0xff] }
  0x66   : > { %v678_v35 = vpop.eup %677  ;;  %697 = vrcp.f32 %v291_v32  ;;  %v293_v36 = vadd.f32 1.0, %v676_v33  ;;  %p801_p11 = pnand %p800_p9, %p794_p13 }
  0x67   : > { %v680_v37 = vpop.eup %679  ;;  %699 = vrcp.f32 %v292_v34  ;;  %v294_v38 = vadd.f32 1.0, %v678_v35 }
  0x68   : > { %v682_v39 = vpop.eup %681  ;;  %701 = vrcp.f32 %v293_v36  ;;  %v295_v40 = vadd.f32 1.0, %v680_v37  ;;  %v377_v36 = vld [vmem:[%s1076_s29 + $0x40] sm:$0xff] }
  0x69   : > { %v684_v41 = vpop.eup %683  ;;  %703 = vrcp.f32 %v294_v38  ;;  %v296_v42 = vadd.f32 1.0, %v682_v39 }
  0x6a   : > { %v686_v43 = vpop.eup %685  ;;  %705 = vrcp.f32 %v295_v40  ;;  %v297_v44 = vadd.f32 1.0, %v684_v41  ;;  %v378_v41 = vld [vmem:[%s1076_s29 + $0x48] sm:$0xff] }
  0x6b   : > { %v688_v46 = vpop.eup %687  ;;  %707 = vrcp.f32 %v296_v42  ;;  %v298_v47 = vadd.f32 1.0, %v686_v43 }
  0x6c   : > { %v690_v49 = vpop.eup %689  ;;  %709 = vrcp.f32 %v297_v44  ;;  %v299_v50 = vadd.f32 1.0, %v688_v46  ;;  %v379_v46 = vld [vmem:[%s1076_s29 + $0x50] sm:$0xff] }
  0x6d   : > { %v692_v52 = vpop.eup %691  ;;  %711 = vrcp.f32 %v298_v47  ;;  %v300_v53 = vadd.f32 1.0, %v690_v49 }
  0x6e   : > { %v694_v55 = vpop.eup %693  ;;  %713 = vrcp.f32 %v299_v50  ;;  %v301_v56 = vadd.f32 1.0, %v692_v52 }
  0x6f   : > { %v696_v58 = vpop.eup %695  ;;  %v337_v59 = vmul.f32 2.0, %v694_v55  ;;  %715 = vrcp.f32 %v300_v53 }
  0x70   : > { %v698_v61 = vpop.eup %697  ;;  %v338_v63 = vmul.f32 2.0, %v696_v58  ;;  %717 = vrcp.f32 %v301_v56  ;;  %v381_v56 = vld [vmem:[%s1076_s29 + $0x60] sm:$0xff] }
  0x71   : > { %v700_v0 = vpop.eup %699  ;;  %v572_v1 = vadd.f32 -1.0, %v337_v59  ;;  %v339_v3 = vmul.f32 2.0, %v698_v61  ;;  %719 = vpow2.f32 %v569_v54 }
  0x72   : > { %v702_v4 = vpop.eup %701  ;;  %v573_v5 = vadd.f32 -1.0, %v338_v63  ;;  %v340_v7 = vmul.f32 2.0, %v700_v0  ;;  %721 = vpow2.f32 %v570_v57 }
  0x73   : > { %v704_v8 = vpop.eup %703  ;;  %v385_v9 = vmul.f32 %v572_v1, %v369_v62  ;;  %v574_v10 = vadd.f32 -1.0, %v339_v3  ;;  %v341_v12 = vmul.f32 2.0, %v702_v4  ;;  %723 = vpow2.f32 %v571_v60 }
  0x74   : > { %v706_v13 = vpop.eup %705  ;;  %v386_v14 = vmul.f32 %v573_v5, %v370_v2  ;;  %v575_v15 = vadd.f32 -1.0, %v340_v7  ;;  %v342_v17 = vmul.f32 2.0, %v704_v8  ;;  %v382_v5 = vld [vmem:[%s1076_s29 + $0x68] sm:$0xff]  ;;  %v383_v8 = vld [vmem:[%s1076_s29 + $0x70] sm:$0xff] }
  0x75   : > { %v708_v18 = vpop.eup %707  ;;  %401 = vst [vmem:[%s1112_s21] sm:$0xff] %v385_v9  ;;  %v387_v19 = vmul.f32 %v574_v10, %v371_v6  ;;  %v576_v20 = vadd.f32 -1.0, %v341_v12  ;;  %v343_v22 = vmul.f32 2.0, %v706_v13 }
  0x76   : > { %v710_v23 = vpop.eup %709  ;;  %402 = vst [vmem:[%s1112_s21 + $0x8] sm:$0xff] %v386_v14  ;;  %v388_v24 = vmul.f32 %v575_v15, %v372_v11  ;;  %v577_v25 = vadd.f32 -1.0, %v342_v17  ;;  %v344_v27 = vmul.f32 2.0, %v708_v18  ;;  %v384_v11 = vld [vmem:[%s1076_s29 + $0x78] sm:$0xff] }
  0x77   : > { %v712_v28 = vpop.eup %711  ;;  %403 = vst [vmem:[%s1112_s21 + $0x10] sm:$0xff] %v387_v19  ;;  %v389_v29 = vmul.f32 %v576_v20, %v373_v16  ;;  %v578_v30 = vadd.f32 -1.0, %v343_v22  ;;  %v345_v32 = vmul.f32 2.0, %v710_v23 }
  0x78   : > { %v714_v33 = vpop.eup %713  ;;  %404 = vst [vmem:[%s1112_s21 + $0x18] sm:$0xff] %v388_v24  ;;  %v390_v34 = vmul.f32 %v577_v25, %v374_v21  ;;  %v579_v35 = vadd.f32 -1.0, %v344_v27  ;;  %v346_v37 = vmul.f32 2.0, %v712_v28 }
  0x79   : > { %v716_v38 = vpop.eup %715  ;;  %405 = vst [vmem:[%s1112_s21 + $0x20] sm:$0xff] %v389_v29  ;;  %v391_v39 = vmul.f32 %v578_v30, %v375_v26  ;;  %v580_v40 = vadd.f32 -1.0, %v345_v32  ;;  %v347_v42 = vmul.f32 2.0, %v714_v33 }
  0x7a   : > { %v718_v43 = vpop.eup %717  ;;  %406 = vst [vmem:[%s1112_s21 + $0x28] sm:$0xff] %v390_v34  ;;  %v392_v44 = vmul.f32 %v579_v35, %v376_v31  ;;  %v581_v45 = vadd.f32 -1.0, %v346_v37  ;;  %v348_v47 = vmul.f32 2.0, %v716_v38 }
  0x7b   : > { %v720_v48 = vpop.eup %719  ;;  %407 = vst [vmem:[%s1112_s21 + $0x30] sm:$0xff] %v391_v39  ;;  %v393_v49 = vmul.f32 %v580_v40, %v377_v36  ;;  %v582_v50 = vadd.f32 -1.0, %v347_v42  ;;  %v349_v52 = vmul.f32 2.0, %v718_v43 }
  0x7c   : > { %v722_v53 = vpop.eup %721  ;;  %408 = vst [vmem:[%s1112_s21 + $0x38] sm:$0xff] %v392_v44  ;;  %v394_v54 = vmul.f32 %v581_v45, %v378_v41  ;;  %v583_v55 = vadd.f32 -1.0, %v348_v47  ;;  %v302_v57 = vadd.f32 1.0, %v720_v48 }
  0x7d   : > { %v724_v58 = vpop.eup %723  ;;  %409 = vst [vmem:[%s1112_s21 + $0x40] sm:$0xff] %v393_v49  ;;  %v395_v59 = vmul.f32 %v582_v50, %v379_v46  ;;  %v584_v60 = vadd.f32 -1.0, %v349_v52  ;;  %v303_v61 = vadd.f32 1.0, %v722_v53 }
  0x7e   : > { %410 = vst [vmem:[%s1112_s21 + $0x48] sm:$0xff] %v394_v54  ;;  %v396_v62 = vmul.f32 %v583_v55, %v380_v51  ;;  %725 = vrcp.f32 %v302_v57  ;;  %v304_v63 = vadd.f32 1.0, %v724_v58 }
  0x7f   : > { %411 = vst [vmem:[%s1112_s21 + $0x50] sm:$0xff] %v395_v59  ;;  %v397_v0 = vmul.f32 %v584_v60, %v381_v56  ;;  %727 = vrcp.f32 %v303_v61 }
  0x80   : > { %412 = vst [vmem:[%s1112_s21 + $0x58] sm:$0xff] %v396_v62  ;;  %729 = vrcp.f32 %v304_v63 }
  0x81   : > { %413 = vst [vmem:[%s1112_s21 + $0x60] sm:$0xff] %v397_v0 }
  0x88   : > { %v726_v1 = vpop.eup %725 }
  0x89   : > { %v728_v2 = vpop.eup %727  ;;  %v350_v3 = vmul.f32 2.0, %v726_v1 }
  0x8a   : > { %v730_v4 = vpop.eup %729  ;;  %v351_v6 = vmul.f32 2.0, %v728_v2 }
  0x8b   : > { %v585_v7 = vadd.f32 -1.0, %v350_v3  ;;  %v352_v9 = vmul.f32 2.0, %v730_v4 }
  0x8c   : > { %v586_v10 = vadd.f32 -1.0, %v351_v6 }
  0x8d   : > { %v398_v12 = vmul.f32 %v585_v7, %v382_v5  ;;  %v587_v13 = vadd.f32 -1.0, %v352_v9 }
  0x8e   : > { %v399_v14 = vmul.f32 %v586_v10, %v383_v8 }
  0x8f   : > { %414 = vst [vmem:[%s1112_s21 + $0x68] sm:$0xff] %v398_v12  ;;  %v400_v15 = vmul.f32 %v587_v13, %v384_v11 }
  0x90   : > { %415 = vst [vmem:[%s1112_s21 + $0x70] sm:$0xff] %v399_v14 }
  0x91   : > { %416 = vst [vmem:[%s1112_s21 + $0x78] sm:$0xff] %v400_v15 }
  0x92   : > { %804 = shalt.err (!%p801_p11)
}
  0x93   : > { %s805_s20 = scalar_lea.hbm %s1143_s30, 2048  ;;  %s809_s5 = scalar_lea.hbm %s1199_s2, 4096 }
  0x94   : > { %p806_p1 = scmp.ne.s32.totalorder %s1143_s30, %s805_s20  ;;  %p810_p5 = scmp.lt.u32.totalorder %s1143_s30, %s1199_s2 }
  0x95   : > { %p811_p4 = scmp.lt.u32.totalorder %s809_s5, %s805_s20  ;;  %p813_p0 = scmp.lt.u32.totalorder %s805_s20, %s1143_s30 }
  0x96   : > { %p807_p6 = pnand %p806_p1, %p1210_p3 }
  0x97   : > { %p812_p8 = por %p811_p4, %p810_p5 }
  0x98   : > { %p808_p2 = pneg %p807_p6 }
  0x99   : > { %p814_p12 = por %p813_p0, %p812_p8 }
  0x9b   : > { %p815_p13 = pnand %p814_p12, %p808_p2 }
  0x9d   : > { %818 = shalt.err (!%p815_p13)
}
  0x9e   : > { %s884_s7 = smov 128   ;;  %s885_s21 = smov 8  }
  0x9f   : > { %600 = dma.vmem_to_hbm [thread:$0]  (%p1210_p3), %s1145_s18, 2048, %s1143_s30, %s418_s12, %s884_s7, %s884_s7, %s885_s21  }
  0xa0 PF: > { %s447_s8 = sand.u32 1, %s857_s9   ;;  %p1211_p7 = scmp.ne.s32.totalorder %s1205_s24, 0 }
  0xa1   : > { %p1212_p10 = scmp.ge.s32.totalorder %s877_s14, 2  ;;  %s448_s19 = scalar_lea.sflag [#allocation4], %s447_s8 }
  0xa3   : > { %p610_p9 = pnand %p1212_p10, %p1211_p7 }
  0xa5   : > { %852 = dma.done.wait (!%p610_p9), %s448_s19, 2048  }
  0xa6   : > { %854 = vsyncadd (!%p610_p9), %s448_s19, 4294965248  ;;  %s21_s14 = sadd.s32 1, %s877_s14   ;;  %s1213_s9 = smov %s861_s10 }
  0xa7   : > { %p18_p11 = scmp.ge.s32.totalorder %s21_s14, 4   ;;  %s1214_s10 = smov %s865_s11 }
  0xa8   : > { %s1215_s11 = smov %s957_s23  ;;  %s1216_s12 = smov %s873_s13 }
  0xa9   : > { %s1217_s13 = smov %s1219_s17  ;;  %20 = sbr.rel (!%p18_p11) target bundleno = 8 (0x8), region = 86 }
  0xb0   :  { %453 = vsyncpa [#allocation3], 1 }
  0xb1   :  { %455 = vsyncpa [#allocation3 + $0x1], 1 }
  0xb2   :  { %456 = vsyncpa [#allocation6], 1 }
  0xb3   :  { %458 = vsyncpa [#allocation6 + $0x1], 1 }
  0xb4   :  { %459 = vsyncpa [#allocation4], 1 }
  0xb5   :  { %461 = vsyncpa [#allocation4 + $0x1], 1 }

</bundles_post_ra>
